<compile_context>
chip_gen: v7x
topology: tpu7x:2x2x1
jax: 0.10.0
libtpu: 0.0.40
codegen_flags: <defaults>
</compile_context>

<pallas_src>
import jax
import jax.numpy as jnp
from jax.experimental import pallas as pl
from jax.experimental.pallas import tpu as pltpu

STATE_DIM = 8
ACTION_DIM = 4
H1 = 400
H2 = 300
# Lane-aligned (multiple-of-128) padded hidden dims -> unmasked vregs / full MXU tiles.
H1_PAD = 512
H2_PAD = 384


def _round_up(n, m):
    return ((n + m - 1) // m) * m


def _value_kernel(x_ref, w1_ref, w2_ref, b2_ref, w3_ref, b3_ref, o_ref):
    # Layer 1: bias already folded into w1 (x carries a trailing 1.0 column).
    # bf16 operands, f32 MXU accumulation.
    x = x_ref[...].astype(jnp.bfloat16)
    h1 = jnp.dot(x, w1_ref[...], preferred_element_type=jnp.float32)
    h1 = jnp.maximum(h1, 0.0)

    # Layer 2: bf16 matmul inputs, f32 accumulation; bias add + ReLU in f32.
    h2 = jnp.dot(h1.astype(jnp.bfloat16), w2_ref[...],
                 preferred_element_type=jnp.float32)
    h2 = jnp.maximum(h2 + b2_ref[...], 0.0)

    # Layer 3 (H2 -> 1): an N=1 matmul wastes the MXU; do a VPU multiply +
    # XLU lane reduction instead (both slots have slack while the MXU works).
    out = jnp.sum(h2 * w3_ref[...], axis=-1, keepdims=True) + b3_ref[...]
    o_ref[...] = out.astype(o_ref.dtype)


def init_params(key, state_dim, action_dim):
    """Logical f32 params mimicking nn.Linear init: U(-1/sqrt(fan_in), +1/sqrt(fan_in)).
    Weights stored as [in_features, out_features] (transpose of torch)."""
    d_in = state_dim + action_dim
    dims = [(d_in, H1), (H1, H2), (H2, 1)]
    params = []
    keys = jax.random.split(key, 2 * len(dims))
    for i, (fi, fo) in enumerate(dims):
        bound = 1.0 / jnp.sqrt(jnp.float32(fi))
        w = jax.random.uniform(keys[2 * i], (fi, fo), jnp.float32, -bound, bound)
        b = jax.random.uniform(keys[2 * i + 1], (1, fo), jnp.float32, -bound, bound)
        params += [w, b]
    return tuple(params)


def prepare_params(params):
    """Convert logical f32 params into the padded / bias-folded kernel layout."""
    w1, b1, w2, b2, w3, b3 = params
    d_in = w1.shape[0]
    # Fold b1 into w1; the wrapper appends a constant 1.0 column to x.
    w1_aug = jnp.concatenate([w1, b1], axis=0)                              # (d_in+1, H1)
    w1_p = jnp.zeros((d_in + 1, H1_PAD), jnp.float32).at[:, :H1].set(w1_aug)
    w2_p = jnp.zeros((H1_PAD, H2_PAD), jnp.float32).at[:H1, :H2].set(w2)
    b2_p = jnp.zeros((1, H2_PAD), jnp.float32).at[:, :H2].set(b2)
    w3_row = jnp.zeros((1, H2_PAD), jnp.float32).at[:, :H2].set(w3.T)       # (1, H2_PAD)
    return (w1_p.astype(jnp.bfloat16), w2_p.astype(jnp.bfloat16),
            b2_p, w3_row, b3)


def value_forward(x, kernel_params, *, tb=256):
    """x: (B, state_dim + action_dim) f32.  Returns torch-style .squeeze() output."""
    w1_p, w2_p, b2_p, w3_row, b3 = kernel_params
    B = x.shape[0]
    d_aug = x.shape[1] + 1

    # Batch tile: multiple of 8 sublanes, capped at `tb`; pad batch to a tile multiple.
    tb = min(tb, _round_up(B, 8))
    b_pad = _round_up(B, tb)
    grid = (b_pad // tb,)

    x_aug = jnp.concatenate([x, jnp.ones((B, 1), x.dtype)], axis=-1)
    if b_pad != B:
        x_aug = jnp.pad(x_aug, ((0, b_pad - B), (0, 0)))

    flops = 2 * b_pad * (d_aug * H1_PAD + H1_PAD * H2_PAD + H2_PAD)
    bytes_accessed = (x_aug.size * 4 + w1_p.size * 2 + w2_p.size * 2
                      + (b2_p.size + w3_row.size + b3.size) * 4 + b_pad * 4)

    const = lambda i: (0, 0)  # weights/biases: same block every step -> stay resident
    out = pl.pallas_call(
        _value_kernel,
        out_shape=jax.ShapeDtypeStruct((b_pad, 1), jnp.float32),
        grid=grid,
        in_specs=[
            pl.BlockSpec((tb, d_aug), lambda i: (i, 0)),   # x tile (pipelined over batch)
            pl.BlockSpec((d_aug, H1_PAD), const),          # w1 (+ folded b1), bf16
            pl.BlockSpec((H1_PAD, H2_PAD), const),         # w2, bf16
            pl.BlockSpec((1, H2_PAD), const),              # b2, f32
            pl.BlockSpec((1, H2_PAD), const),              # w3 as a row, f32
            pl.BlockSpec((1, 1), const),                   # b3, f32
        ],
        out_specs=pl.BlockSpec((tb, 1), lambda i: (i, 0)),
        compiler_params=pltpu.CompilerParams(
            dimension_semantics=("parallel",),   # shard batch across TCs on v7x
            vmem_limit_bytes=8 << 20,            # tight: weights ~0.8 MB + small tiles
        ),
        cost_estimate=pl.CostEstimate(flops=flops, transcendentals=0,
                                      bytes_accessed=bytes_accessed),
    )(x_aug, w1_p, w2_p, b2_p, w3_row, b3)

    # torch's .squeeze(): drop singleton dims (trailing 1; also batch if B == 1).
    return jnp.squeeze(out[:B])


if __name__ == "__main__":
    key = jax.random.PRNGKey(0)
    k_param, k_state, k_action = jax.random.split(key, 3)

    params = init_params(k_param, STATE_DIM, ACTION_DIM)
    kernel_params = prepare_params(params)

    batch = 2
    state = jax.random.normal(k_state, (batch, STATE_DIM), jnp.float32)
    action = jax.random.normal(k_action, (batch, ACTION_DIM), jnp.float32)
    inputs = jnp.concatenate([state, action], axis=-1)  # (B, state_dim + action_dim)

    y = value_forward(inputs, kernel_params)
    jax.block_until_ready(y)
    assert y.shape == (batch,)

    # Reference 1: same bf16 matmul-input rounding as the kernel (tight check).
    w1_p, w2_p, b2_p, w3_row, b3_k = kernel_params
    x_aug = jnp.concatenate([inputs, jnp.ones((batch, 1), inputs.dtype)], axis=-1)
    h1 = jnp.maximum(jnp.dot(x_aug.astype(jnp.bfloat16), w1_p,
                             preferred_element_type=jnp.float32), 0.0)
    h2 = jnp.maximum(jnp.dot(h1.astype(jnp.bfloat16), w2_p,
                             preferred_element_type=jnp.float32) + b2_p, 0.0)
    ref_bf16 = jnp.squeeze(jnp.sum(h2 * w3_row, axis=-1, keepdims=True) + b3_k)
    assert jnp.allclose(y, ref_bf16, atol=1e-4, rtol=1e-4)

    # Reference 2: pure-f32 torch semantics (loose check, bf16 matmul rounding).
    w1, b1, w2, b2, w3, b3 = params
    ref_f32 = jnp.maximum(inputs @ w1 + b1, 0.0)
    ref_f32 = jnp.maximum(ref_f32 @ w2 + b2, 0.0)
    ref_f32 = jnp.squeeze(ref_f32 @ w3 + b3)
    assert jnp.allclose(y, ref_f32, atol=5e-2, rtol=5e-2)

    print("KERNEL_OK")
</pallas_src>

<mosaic_0001>
module attributes {stable_mosaic.version = 11 : i64} {
  func.func @_value_kernel(%arg0: i32, %arg1: memref<8x13xf32, #tpu.memory_space<vmem>>, %arg2: memref<13x512xbf16, #tpu.memory_space<vmem>>, %arg3: memref<512x384xbf16, #tpu.memory_space<vmem>>, %arg4: memref<1x384xf32, #tpu.memory_space<vmem>>, %arg5: memref<1x384xf32, #tpu.memory_space<vmem>>, %arg6: memref<1x1xf32, #tpu.memory_space<vmem>>, %arg7: memref<8x1xf32, #tpu.memory_space<vmem>>) attributes {dimension_semantics = [#tpu.dimension_semantics<parallel>], iteration_bounds = array<i64: 1>, scalar_prefetch = 0 : i64, scratch_operands = 0 : i64, tpu.core_type = #tpu.core_type<tc>, window_params = [{transform_indices = @transform_0, window_bounds = array<i64: 8, 13>}, {pipeline_mode = #tpu.pipeline_mode<synchronous>, transform_indices = @transform_1, window_bounds = array<i64: 13, 512>}, {pipeline_mode = #tpu.pipeline_mode<synchronous>, transform_indices = @transform_2, window_bounds = array<i64: 512, 384>}, {pipeline_mode = #tpu.pipeline_mode<synchronous>, transform_indices = @transform_3, window_bounds = array<i64: 1, 384>}, {pipeline_mode = #tpu.pipeline_mode<synchronous>, transform_indices = @transform_4, window_bounds = array<i64: 1, 384>}, {pipeline_mode = #tpu.pipeline_mode<synchronous>, transform_indices = @transform_5, window_bounds = array<i64: 1, 1>}, {transform_indices = @transform_6, window_bounds = array<i64: 8, 1>}]} {
    %c0 = arith.constant 0 : index
    %c0_0 = arith.constant 0 : index
    %0 = vector.load %arg1[%c0, %c0_0] : memref<8x13xf32, #tpu.memory_space<vmem>>, vector<8x13xf32>
    %1 = arith.truncf %0 : vector<8x13xf32> to vector<8x13xbf16>
    %c0_1 = arith.constant 0 : index
    %c0_2 = arith.constant 0 : index
    %2 = vector.load %arg2[%c0_1, %c0_2] : memref<13x512xbf16, #tpu.memory_space<vmem>>, vector<13x512xbf16>
    %cst = arith.constant dense<0.000000e+00> : vector<8x512xf32>
    %3 = tpu.matmul %1, %2, %cst {dimension_numbers = #tpu.dot_dimension_numbers<[1], [0], [0], [1], [0, 0, 1, 1], [], []>} : vector<8x13xbf16>, vector<13x512xbf16>, vector<8x512xf32> -> vector<8x512xf32>
    %cst_3 = arith.constant 0.000000e+00 : f32
    %4 = vector.broadcast %cst_3 : f32 to vector<8x512xf32>
    %5 = arith.maximumf %3, %4 : vector<8x512xf32>
    %6 = arith.truncf %5 : vector<8x512xf32> to vector<8x512xbf16>
    %c0_4 = arith.constant 0 : index
    %c0_5 = arith.constant 0 : index
    %7 = vector.load %arg3[%c0_4, %c0_5] : memref<512x384xbf16, #tpu.memory_space<vmem>>, vector<512x384xbf16>
    %cst_6 = arith.constant dense<0.000000e+00> : vector<8x384xf32>
    %8 = tpu.matmul %6, %7, %cst_6 {dimension_numbers = #tpu.dot_dimension_numbers<[1], [0], [0], [1], [0, 0, 1, 1], [], []>} : vector<8x512xbf16>, vector<512x384xbf16>, vector<8x384xf32> -> vector<8x384xf32>
    %c0_7 = arith.constant 0 : index
    %c0_8 = arith.constant 0 : index
    %9 = vector.load %arg4[%c0_7, %c0_8] : memref<1x384xf32, #tpu.memory_space<vmem>>, vector<1x384xf32>
    %10 = vector.broadcast %9 : vector<1x384xf32> to vector<8x384xf32>
    %11 = arith.addf %8, %10 : vector<8x384xf32>
    %cst_9 = arith.constant 0.000000e+00 : f32
    %12 = vector.broadcast %cst_9 : f32 to vector<8x384xf32>
    %13 = arith.maximumf %11, %12 : vector<8x384xf32>
    %c0_10 = arith.constant 0 : index
    %c0_11 = arith.constant 0 : index
    %14 = vector.load %arg5[%c0_10, %c0_11] : memref<1x384xf32, #tpu.memory_space<vmem>>, vector<1x384xf32>
    %15 = vector.broadcast %14 : vector<1x384xf32> to vector<8x384xf32>
    %16 = arith.mulf %13, %15 : vector<8x384xf32>
    %cst_12 = arith.constant dense<0.000000e+00> : vector<8xf32>
    %17 = vector.multi_reduction <add>, %16, %cst_12 [1] : vector<8x384xf32> to vector<8xf32>
    %18 = vector.shape_cast %17 : vector<8xf32> to vector<8x1xf32>
    %c0_13 = arith.constant 0 : index
    %c0_14 = arith.constant 0 : index
    %19 = vector.load %arg6[%c0_13, %c0_14] : memref<1x1xf32, #tpu.memory_space<vmem>>, vector<1x1xf32>
    %20 = vector.broadcast %19 : vector<1x1xf32> to vector<8x1xf32>
    %21 = arith.addf %18, %20 : vector<8x1xf32>
    %c0_15 = arith.constant 0 : index
    %c0_16 = arith.constant 0 : index
    %22 = vector.load %arg7[%c0_15, %c0_16] : memref<8x1xf32, #tpu.memory_space<vmem>>, vector<8x1xf32>
    tpu.vector_store %arg7[%c0_15, %c0_16], %21 {strides = array<i32>} : memref<8x1xf32, #tpu.memory_space<vmem>>, vector<8x1xf32>,
    return
  }
  func.func @transform_0(%arg0: i32) -> (i32, i32) {
    %c0_i32 = arith.constant 0 : i32
    %c0_i32_0 = arith.constant 0 : i32
    return %arg0, %c0_i32 : i32, i32
  }
  func.func @transform_1(%arg0: i32) -> (i32, i32) {
    %c0_i32 = arith.constant 0 : i32
    %c0_i32_0 = arith.constant 0 : i32
    %c0_i32_1 = arith.constant 0 : i32
    return %c0_i32, %c0_i32_0 : i32, i32
  }
  func.func @transform_2(%arg0: i32) -> (i32, i32) {
    %c0_i32 = arith.constant 0 : i32
    %c0_i32_0 = arith.constant 0 : i32
    %c0_i32_1 = arith.constant 0 : i32
    return %c0_i32, %c0_i32_0 : i32, i32
  }
  func.func @transform_3(%arg0: i32) -> (i32, i32) {
    %c0_i32 = arith.constant 0 : i32
    %c0_i32_0 = arith.constant 0 : i32
    %c0_i32_1 = arith.constant 0 : i32
    return %c0_i32, %c0_i32_0 : i32, i32
  }
  func.func @transform_4(%arg0: i32) -> (i32, i32) {
    %c0_i32 = arith.constant 0 : i32
    %c0_i32_0 = arith.constant 0 : i32
    %c0_i32_1 = arith.constant 0 : i32
    return %c0_i32, %c0_i32_0 : i32, i32
  }
  func.func @transform_5(%arg0: i32) -> (i32, i32) {
    %c0_i32 = arith.constant 0 : i32
    %c0_i32_0 = arith.constant 0 : i32
    %c0_i32_1 = arith.constant 0 : i32
    return %c0_i32, %c0_i32_0 : i32, i32
  }
  func.func @transform_6(%arg0: i32) -> (i32, i32) {
    %c0_i32 = arith.constant 0 : i32
    %c0_i32_0 = arith.constant 0 : i32
    return %arg0, %c0_i32 : i32, i32
  }
}

</mosaic_0001>

<bundles_post_ra>
// kernel: tpu_custom_call.1
= control target key start
LH: loop header
LB: loop body
LE: loop exit
PB: predicated region body
PF: predicated region fallthrough
CT: control target
= control target key end

     0   :  { %s1519_s0 = inlined_call_operand.hbm [shape: f32[8,13], index: 0, kind: input, shape index: {}]   ;;  %s1520_s1 = inlined_call_operand.hbm [shape: bf16[13,512], index: 1, kind: input, shape index: {}]   ;;  %s1521_s2 = inlined_call_operand.hbm [shape: bf16[512,384], index: 2, kind: input, shape index: {}]   ;;  %s1522_s3 = inlined_call_operand.vmem [shape: f32[1,384], index: 3, kind: input, shape index: {}]   ;;  %s1523_s4 = inlined_call_operand.vmem [shape: f32[1,384], index: 4, kind: input, shape index: {}]   ;;  %s1524_s5 = inlined_call_operand.<no memory space> [shape: f32[1,1], index: 5, kind: input, shape index: {}]   ;;  %s1525_s6 = inlined_call_operand.vmem [shape: f32[8,1], index: 6, kind: output, shape index: {}]  }
   0x1   :  { %v11_v0 = vstv %s1524_s5 }
   0x2   :  { %12 = vst [vmem:[#allocation2] sm:$0x1] %v11_v0 }
   0x3   :  { %13 = vsyncpa [#allocation4], 0 }
   0x4   :  { %14 = vsyncpa [#allocation6], 0  ;;  %s1425_s23 = smov [#allocation5]   ;;  %s1355_s27 = scalar_lea.hbm %s1520_s1, 512 }
   0x5   :  { %s30_s24 = sshll.u32 %s1425_s23, 4  ;;  %p1356_p0 = scmp.ne.s32.totalorder %s1520_s1, %s1355_s27  ;;  %s31_s24 = int_to_ptr.vmem [resolvable:$true] %s30_s24 }
   0x6   :  { %p1359_p1 = scmp.lt.u32.totalorder %s1355_s27, %s1520_s1 }
   0x8   :  { %p1361_p2 = pnand %p1359_p1, %p1356_p0 }
   0xa   :  { %1364 = shalt.err (!%p1361_p2)
}
   0xb   :  { %s1365_s5 = scalar_lea.vmem %s31_s24, 512  ;;  %p1370_p4 = scmp.lt.s32.totalorder %s31_s24, %s31_s24 }
   0xc   :  { %p1366_p3 = scmp.ne.s32.totalorder %s31_s24, %s1365_s5  ;;  %p1371_p5 = scmp.lt.s32.totalorder %s1365_s5, %s1365_s5 }
   0xe   :  { %p1372_p6 = por %p1371_p5, %p1370_p4 }
  0x10   :  { %p1373_p7 = pnand %p1372_p6, %p1366_p3 }
  0x12   :  { %1376 = shalt.err (!%p1373_p7)
}
  0x13   :  { %s1426_s8 = smov 256   ;;  %s1427_s9 = smov 16  }
  0x14   :  { %36 = dma.hbm_to_vmem [thread:$0]  %s1520_s1, 512, %s31_s24, [#allocation6], %s1426_s8, %s1426_s8, %s1427_s9  }
  0x15   :  { %s1428_s12 = smov [#allocation3]   ;;  %s1429_s14 = smov [#allocation7]  }
  0x16   :  { %s21_s13 = sshll.u32 %s1428_s12, 4  ;;  %s42_s15 = sshll.u32 %s1429_s14, 4  ;;  %s22_s13 = int_to_ptr.vmem [resolvable:$true] %s21_s13  ;;  %s43_s15 = int_to_ptr.vmem [resolvable:$true] %s42_s15 }
  0x17   :  { %s1377_s18 = scalar_lea.hbm %s1519_s0, 128 }
  0x18   :  { %p1378_p8 = scmp.ne.s32.totalorder %s1519_s0, %s1377_s18  ;;  %p1381_p9 = scmp.lt.u32.totalorder %s1377_s18, %s1519_s0 }
  0x1a   :  { %p1383_p10 = pnand %p1381_p9, %p1378_p8 }
  0x1c   :  { %1386 = shalt.err (!%p1383_p10)
}
  0x1d   :  { %s1387_s1 = scalar_lea.vmem %s22_s13, 128  ;;  %p1392_p12 = scmp.lt.s32.totalorder %s22_s13, %s22_s13 }
  0x1e   :  { %p1388_p11 = scmp.ne.s32.totalorder %s22_s13, %s1387_s1  ;;  %p1393_p13 = scmp.lt.s32.totalorder %s1387_s1, %s1387_s1 }
  0x20   :  { %p1394_p0 = por %p1393_p13, %p1392_p12 }
  0x22   :  { %p1395_p1 = pnand %p1394_p0, %p1388_p11 }
  0x24   :  { %1398 = shalt.err (!%p1395_p1)
}
  0x25   :  { %24 = dma.hbm_to_vmem [thread:$0]  %s1519_s0, 128, %s22_s13, [#allocation4]  }
  0x26   :  { %s1399_s27 = scalar_lea.hbm %s1521_s2, 12288 }
  0x27   :  { %p1400_p2 = scmp.ne.s32.totalorder %s1521_s2, %s1399_s27  ;;  %p1403_p3 = scmp.lt.u32.totalorder %s1399_s27, %s1521_s2 }
  0x29   :  { %p1405_p4 = pnand %p1403_p3, %p1400_p2 }
  0x2b   :  { %1408 = shalt.err (!%p1405_p4)
}
  0x2c   :  { %s1409_s5 = scalar_lea.vmem %s43_s15, 12288  ;;  %p1414_p6 = scmp.lt.s32.totalorder %s43_s15, %s43_s15 }
  0x2d   :  { %p1410_p5 = scmp.ne.s32.totalorder %s43_s15, %s1409_s5  ;;  %p1415_p7 = scmp.lt.s32.totalorder %s1409_s5, %s1409_s5 }
  0x2f   :  { %p1416_p8 = por %p1415_p7, %p1414_p6 }
  0x31   :  { %p1417_p9 = pnand %p1416_p8, %p1410_p5 }
  0x33   :  { %1420 = shalt.err (!%p1417_p9)
}
  0x34   :  { %s1430_s0 = smov 192   ;;  %s1431_s8 = smov 12  }
  0x35   :  { %48 = dma.hbm_to_vmem [thread:$0]  %s1521_s2, 12288, %s43_s15, [#allocation6], %s1430_s0, %s1430_s0, %s1431_s8  }
  0x36   :  { %1421 = dma.done.wait [#allocation4], 128  }
  0x37   :  { %1422 = vsyncadd [#allocation4], 4294967168 }
  0x38   :  { %1423 = dma.done.wait [#allocation6], 12800  }
  0x39   :  { %1424 = vsyncadd [#allocation6], 4294954496  ;;  %vm91_vm0 = vcmask 1045504   ;;  %v1432_v1 = vmov 0   ;;  %vm92_vm1 = vcmask 1046528   ;;  %v1433_v2 = vmov 65535  }
  0x3a   :  { %139 = vmatprep.mubr.bf16.mxu1 %v1432_v1  ;;  %v93_v3 = vsel %vm91_vm0, 4294967295, %v1433_v2  ;;  %v1221_v5 = vld [vmem:[#allocation5 + $0x4] ss:$16 sps:$4 sm:$0x7f]   ;;  %v65_v7 = vld [vmem:[#allocation3] sm:$0xff]  ;;  %vm87_vm2 = vcmask 105472  }
  0x3b   :  { %v94_v4 = vsel %vm92_vm1, %v93_v3, 0  ;;  %v1223_v6 = vld [vmem:[#allocation5] ss:$16 sps:$4 sm:$0x7f]   ;;  %v66_v13 = vpack.c.bf16 %v65_v7, %v65_v7  ;;  %v1230_v17 = vld [vmem:[#allocation7 + $0x1c] ss:$12 sps:$4 sm:$0xff]  }
  0x3c   :  { %v99_v8 = vand.u32 %v1221_v5, %v94_v4  ;;  %v1224_v9 = vld [vmem:[#allocation5 + $0x8] ss:$16 sps:$4 sm:$0x7f]   ;;  %v96_v10 = vand.u32 %v1223_v6, %v94_v4  ;;  %v1226_v11 = vld [vmem:[#allocation5 + $0xc] ss:$16 sps:$4 sm:$0x7f]  }
  0x3d   :  { %v1227_v12 = vld [vmem:[#allocation7 + $0x4] ss:$12 sps:$4 sm:$0xff]   ;;  %v1229_v14 = vld [vmem:[#allocation7] ss:$12 sps:$4 sm:$0xff]   ;;  %v105_v15 = vand.u32 %v1226_v11, %v94_v4  ;;  %v102_v16 = vand.u32 %v1224_v9, %v94_v4  ;;  %v1238_v22 = vld [vmem:[#allocation7 + $0x48] ss:$12 sps:$4 sm:$0xff]  }
  0x3e   :  { %107 = vmatprep.subr.bf16.mxu1 %v99_v8  ;;  %854 = vmatprep.subr.bf16.mxu0 %v1227_v12  ;;  %v1232_v18 = vld [vmem:[#allocation7 + $0x18] ss:$12 sps:$4 sm:$0xff]   ;;  %v1233_v19 = vld [vmem:[#allocation7 + $0x34] ss:$12 sps:$4 sm:$0xff]   ;;  %v1235_v20 = vld [vmem:[#allocation7 + $0x30] ss:$12 sps:$4 sm:$0xff]  }
  0x3f   :  { %108 = vmatpush1.bf16.msra.mxu1 %v96_v10  ;;  %855 = vmatpush1.bf16.msra.mxu0 %v1229_v14  ;;  %v1236_v21 = vld [vmem:[#allocation7 + $0x4c] ss:$12 sps:$4 sm:$0xff]   ;;  %v1239_v23 = vld [vmem:[#allocation7 + $0x64] ss:$12 sps:$4 sm:$0xff]   ;;  %v1253_v24 = vld [vmem:[#allocation7 + $0xc8] ss:$12 sps:$4 sm:$0xff]  }
  0x40   :  { %148 = vmatprep.subr.bf16.mxu1 %v105_v15  ;;  %856 = vmatprep.subr.bf16.mxu0 %v1230_v17  ;;  %v1255_v25 = vld [vmem:[#allocation7 + $0x8] ss:$12 sps:$4 sm:$0xff]   ;;  %v1241_v26 = vld [vmem:[#allocation7 + $0x60] ss:$12 sps:$4 sm:$0xff]   ;;  %v1244_v30 = vld [vmem:[#allocation7 + $0x78] ss:$12 sps:$4 sm:$0xff]  }
  0x41   :  { %v1258_v27 = vld [vmem:[#allocation7 + $0xe0] ss:$12 sps:$4 sm:$0xff]   ;;  %v1242_v28 = vld [vmem:[#allocation7 + $0x7c] ss:$12 sps:$4 sm:$0xff]   ;;  %v1263_v32 = vld [vmem:[#allocation7 + $0xf8] ss:$12 sps:$4 sm:$0xff]  }
  0x42   :  { %1063 = vmatmul.mubr.msk.bf16.vlgmr.msra.gmra.mrb[0].mxu1 %vm87_vm2, %v66_v13  ;;  %v1260_v29 = vld [vmem:[#allocation7 + $0x20] ss:$12 sps:$4 sm:$0xff]   ;;  %v1265_v33 = vld [vmem:[#allocation7 + $0x38] ss:$12 sps:$4 sm:$0xff]   ;;  %v1247_v34 = vld [vmem:[#allocation7 + $0x90] ss:$12 sps:$4 sm:$0xff]  }
  0x43   :  { %149 = vmatpush1.bf16.msra.mxu1 %v102_v16  ;;  %180 = vmatprep.mubr.bf16.mxu1 %v1432_v1  ;;  %v1245_v31 = vld [vmem:[#allocation7 + $0x94] ss:$12 sps:$4 sm:$0xff]   ;;  %v1268_v35 = vld [vmem:[#allocation7 + $0x110] ss:$12 sps:$4 sm:$0xff]   ;;  %v1248_v37 = vld [vmem:[#allocation7 + $0xac] ss:$12 sps:$4 sm:$0xff]  }
  0x44   :  { %857 = vmatpush1.bf16.msra.mxu0 %v1232_v18  ;;  %1162 = vmatprep.subr.bf16.mxu1 %v1253_v24  ;;  %v1270_v36 = vld [vmem:[#allocation7 + $0x50] ss:$12 sps:$4 sm:$0xff]   ;;  %v1273_v38 = vld [vmem:[#allocation7 + $0x128] ss:$12 sps:$4 sm:$0xff]   ;;  %v1278_v42 = vld [vmem:[#allocation7 + $0x140] ss:$12 sps:$4 sm:$0xff]  }
  0x45   :  { %858 = vmatprep.subr.bf16.mxu0 %v1233_v19  ;;  %v1250_v39 = vld [vmem:[#allocation7 + $0xa8] ss:$12 sps:$4 sm:$0xff]   ;;  %v1251_v41 = vld [vmem:[#allocation7 + $0xc4] ss:$12 sps:$4 sm:$0xff]   ;;  %v1254_v43 = vld [vmem:[#allocation7 + $0xc0] ss:$12 sps:$4 sm:$0xff]  }
  0x46   :  { %v1275_v40 = vld [vmem:[#allocation7 + $0x68] ss:$12 sps:$4 sm:$0xff]   ;;  %v1280_v44 = vld [vmem:[#allocation7 + $0x80] ss:$12 sps:$4 sm:$0xff]   ;;  %v1283_v46 = vld [vmem:[#allocation7 + $0x158] ss:$12 sps:$4 sm:$0xff]  }
  0x47   :  { %v1256_v45 = vld [vmem:[#allocation7 + $0xdc] ss:$12 sps:$4 sm:$0xff]   ;;  %v1259_v47 = vld [vmem:[#allocation7 + $0xd8] ss:$12 sps:$4 sm:$0xff]   ;;  %v1261_v49 = vld [vmem:[#allocation7 + $0xf4] ss:$12 sps:$4 sm:$0xff]  }
  0x48   :  { %859 = vmatpush1.bf16.msra.mxu0 %v1235_v20  ;;  %v1285_v48 = vld [vmem:[#allocation7 + $0x98] ss:$12 sps:$4 sm:$0xff]   ;;  %v1264_v50 = vld [vmem:[#allocation7 + $0xf0] ss:$12 sps:$4 sm:$0xff]   ;;  %v1269_v52 = vld [vmem:[#allocation7 + $0x108] ss:$12 sps:$4 sm:$0xff]  }
  0x49   :  { %860 = vmatprep.subr.bf16.mxu0 %v1236_v21  ;;  %v1266_v51 = vld [vmem:[#allocation7 + $0x10c] ss:$12 sps:$4 sm:$0xff]   ;;  %v1271_v53 = vld [vmem:[#allocation7 + $0x124] ss:$12 sps:$4 sm:$0xff]   ;;  %v1276_v55 = vld [vmem:[#allocation7 + $0x13c] ss:$12 sps:$4 sm:$0xff]  }
  0x4a   :  { %1064 = vmatmul.mubr.msk.bf16.vlgmr.msra.gmra.mrb[4].mxu1 %vm87_vm2, %v66_v13  ;;  %v1274_v54 = vld [vmem:[#allocation7 + $0x120] ss:$12 sps:$4 sm:$0xff]   ;;  %v1279_v56 = vld [vmem:[#allocation7 + $0x138] ss:$12 sps:$4 sm:$0xff]   ;;  %v1284_v58 = vld [vmem:[#allocation7 + $0x150] ss:$12 sps:$4 sm:$0xff]  }
  0x4b   :  { %1163 = vmatpush3.bf16.msra.mxu1 %v1255_v25  ;;  %v1281_v57 = vld [vmem:[#allocation7 + $0x154] ss:$12 sps:$4 sm:$0xff]   ;;  %v1286_v59 = vld [vmem:[#allocation7 + $0x16c] ss:$12 sps:$4 sm:$0xff]   ;;  %v1288_v60 = vld [vmem:[#allocation7 + $0x170] ss:$12 sps:$4 sm:$0xff]  }
  0x4c   :  { %861 = vmatpush1.bf16.msra.mxu0 %v1238_v22  ;;  %1164 = vmatprep.subr.bf16.mxu1 %v1258_v27  ;;  %v1289_v61 = vld [vmem:[#allocation7 + $0x168] ss:$12 sps:$4 sm:$0xff]   ;;  %v1290_v62 = vld [vmem:[#allocation7 + $0xb0] ss:$12 sps:$4 sm:$0xff]   ;;  %v1291_v8 = vld [vmem:[#allocation7 + $0x180] ss:$12 sps:$4 sm:$0xff]  }
  0x4d   :  { %862 = vmatprep.subr.bf16.mxu0 %v1239_v23  ;;  %v1293_v63 = vld [vmem:[#allocation7 + $0x184] ss:$12 sps:$4 sm:$0xff]   ;;  %v1294_v0 = vld [vmem:[#allocation7 + $0x248] ss:$12 sps:$4 sm:$0xff]   ;;  %v1299_v12 = vld [vmem:[#allocation7 + $0x260] ss:$12 sps:$4 sm:$0xff]  }
  0x4e   :  { %v1295_v9 = vld [vmem:[#allocation7 + $0x188] ss:$12 sps:$4 sm:$0xff]   ;;  %v1296_v13 = vld [vmem:[#allocation7 + $0x198] ss:$12 sps:$4 sm:$0xff]   ;;  %v1300_v14 = vld [vmem:[#allocation7 + $0x1a0] ss:$12 sps:$4 sm:$0xff]  }
  0x4f   :  { %1165 = vmatpush3.bf16.msra.mxu1 %v1260_v29  ;;  %v1298_v11 = vld [vmem:[#allocation7 + $0x19c] ss:$12 sps:$4 sm:$0xff]   ;;  %v1303_v16 = vld [vmem:[#allocation7 + $0x1b4] ss:$12 sps:$4 sm:$0xff]   ;;  %v1304_v17 = vld [vmem:[#allocation7 + $0x278] ss:$12 sps:$4 sm:$0xff]  }
  0x50   :  { %863 = vmatpush1.bf16.msra.mxu0 %v1241_v26  ;;  %1166 = vmatprep.subr.bf16.mxu1 %v1263_v32  ;;  %v1301_v22 = vld [vmem:[#allocation7 + $0x1b0] ss:$12 sps:$4 sm:$0xff]   ;;  %v1305_v23 = vld [vmem:[#allocation7 + $0x1b8] ss:$12 sps:$4 sm:$0xff]   ;;  %v1306_v27 = vld [vmem:[#allocation7 + $0x1c8] ss:$12 sps:$4 sm:$0xff]  }
  0x51   :  { %864 = vmatprep.subr.bf16.mxu0 %v1242_v28  ;;  %v1308_v25 = vld [vmem:[#allocation7 + $0x1cc] ss:$12 sps:$4 sm:$0xff]   ;;  %v1309_v26 = vld [vmem:[#allocation7 + $0x290] ss:$12 sps:$4 sm:$0xff]   ;;  %v1315_v32 = vld [vmem:[#allocation7 + $0x1e8] ss:$12 sps:$4 sm:$0xff]  }
  0x52   :  { %v1310_v28 = vld [vmem:[#allocation7 + $0x1d0] ss:$12 sps:$4 sm:$0xff]   ;;  %vm1051_vm3 = vcmask 7168  }
  0x53   :  { %1167 = vmatpush3.bf16.msra.mxu1 %v1265_v33  ;;  %v1313_v29 = vld [vmem:[#allocation7 + $0x1e4] ss:$12 sps:$4 sm:$0xff]   ;;  %v1318_v33 = vld [vmem:[#allocation7 + $0x1fc] ss:$12 sps:$4 sm:$0xff]  }
  0x54   :  { %865 = vmatpush1.bf16.msra.mxu0 %v1244_v30  ;;  %1168 = vmatprep.subr.bf16.mxu1 %v1268_v35  ;;  %v1314_v30 = vld [vmem:[#allocation7 + $0x2a8] ss:$12 sps:$4 sm:$0xff]   ;;  %v1316_v35 = vld [vmem:[#allocation7 + $0x1f8] ss:$12 sps:$4 sm:$0xff]  }
  0x55   :  { %866 = vmatprep.subr.bf16.mxu0 %v1245_v31  ;;  %v1311_v31 = vld [vmem:[#allocation7 + $0x1e0] ss:$12 sps:$4 sm:$0xff]  }
  0x57   :  { %1169 = vmatpush3.bf16.msra.mxu1 %v1270_v36  ;;  %v1320_v36 = vld [vmem:[#allocation7 + $0x200] ss:$12 sps:$4 sm:$0xff]  }
  0x58   :  { %867 = vmatpush1.bf16.msra.mxu0 %v1247_v34  ;;  %1170 = vmatprep.subr.bf16.mxu1 %v1273_v38  ;;  %v1319_v34 = vld [vmem:[#allocation7 + $0x2c0] ss:$12 sps:$4 sm:$0xff]   ;;  %v1324_v38 = vld [vmem:[#allocation7 + $0x2d8] ss:$12 sps:$4 sm:$0xff]  }
  0x59   :  { %868 = vmatprep.subr.bf16.mxu0 %v1248_v37  ;;  %v1323_v37 = vld [vmem:[#allocation7 + $0x214] ss:$12 sps:$4 sm:$0xff]  }
  0x5b   :  { %1171 = vmatpush3.bf16.msra.mxu1 %v1275_v40  ;;  %v1325_v40 = vld [vmem:[#allocation7 + $0x218] ss:$12 sps:$4 sm:$0xff]  }
  0x5c   :  { %869 = vmatpush1.bf16.msra.mxu0 %v1250_v39  ;;  %1172 = vmatprep.subr.bf16.mxu1 %v1278_v42  ;;  %v1321_v39 = vld [vmem:[#allocation7 + $0x210] ss:$12 sps:$4 sm:$0xff]  }
  0x5d   :  { %870 = vmatprep.subr.bf16.mxu0 %v1251_v41  ;;  %v1328_v41 = vld [vmem:[#allocation7 + $0x22c] ss:$12 sps:$4 sm:$0xff]   ;;  %v1329_v42 = vld [vmem:[#allocation7 + $0x2f0] ss:$12 sps:$4 sm:$0xff]  }
  0x5f   :  { %1173 = vmatpush3.bf16.msra.mxu1 %v1280_v44  ;;  %v1326_v44 = vld [vmem:[#allocation7 + $0x228] ss:$12 sps:$4 sm:$0xff]  }
  0x60   :  { %871 = vmatpush1.bf16.msra.mxu0 %v1254_v43  ;;  %1174 = vmatprep.subr.bf16.mxu1 %v1283_v46  ;;  %v1333_v46 = vld [vmem:[#allocation7 + $0x244] ss:$12 sps:$4 sm:$0xff]  }
  0x61   :  { %872 = vmatprep.subr.bf16.mxu0 %v1256_v45  ;;  %v1330_v45 = vld [vmem:[#allocation7 + $0x230] ss:$12 sps:$4 sm:$0xff]  }
  0x63   :  { %1175 = vmatpush3.bf16.msra.mxu1 %v1285_v48  ;;  %v1331_v48 = vld [vmem:[#allocation7 + $0x240] ss:$12 sps:$4 sm:$0xff]  }
  0x64   :  { %873 = vmatpush1.bf16.msra.mxu0 %v1259_v47  ;;  %1176 = vmatprep.subr.bf16.mxu1 %v1288_v60  ;;  %v1349_v60 = vld [vmem:[#allocation7 + $0x2d0] ss:$12 sps:$4 sm:$0xff]  }
  0x65   :  { %874 = vmatprep.subr.bf16.mxu0 %v1261_v49  ;;  %v1336_v49 = vld [vmem:[#allocation7 + $0x25c] ss:$12 sps:$4 sm:$0xff]  }
  0x67   :  { %1177 = vmatpush3.bf16.msra.mxu1 %v1290_v62  ;;  %v1352_v62 = vld [vmem:[#allocation7 + $0x2e8] ss:$12 sps:$4 sm:$0xff]  }
  0x68   :  { %875 = vmatpush1.bf16.msra.mxu0 %v1264_v50  ;;  %1184 = vmatprep.subr.bf16.mxu1 %v1294_v0  ;;  %v1334_v50 = vld [vmem:[#allocation7 + $0x258] ss:$12 sps:$4 sm:$0xff]  }
  0x69   :  { %876 = vmatprep.subr.bf16.mxu0 %v1266_v51  ;;  %v1339_v51 = vld [vmem:[#allocation7 + $0x274] ss:$12 sps:$4 sm:$0xff]  }
  0x6c   :  { %877 = vmatpush1.bf16.msra.mxu0 %v1269_v52  ;;  %v1337_v52 = vld [vmem:[#allocation7 + $0x270] ss:$12 sps:$4 sm:$0xff]  }
  0x6d   :  { %878 = vmatprep.subr.bf16.mxu0 %v1271_v53  ;;  %v1342_v53 = vld [vmem:[#allocation7 + $0x28c] ss:$12 sps:$4 sm:$0xff]  }
  0x70   :  { %879 = vmatpush1.bf16.msra.mxu0 %v1274_v54  ;;  %v1340_v54 = vld [vmem:[#allocation7 + $0x288] ss:$12 sps:$4 sm:$0xff]  }
  0x71   :  { %880 = vmatprep.subr.bf16.mxu0 %v1276_v55  ;;  %v1345_v55 = vld [vmem:[#allocation7 + $0x2a4] ss:$12 sps:$4 sm:$0xff]  }
  0x74   :  { %881 = vmatpush1.bf16.msra.mxu0 %v1279_v56  ;;  %v1343_v56 = vld [vmem:[#allocation7 + $0x2a0] ss:$12 sps:$4 sm:$0xff]  }
  0x75   :  { %882 = vmatprep.subr.bf16.mxu0 %v1281_v57  ;;  %v1348_v57 = vld [vmem:[#allocation7 + $0x2bc] ss:$12 sps:$4 sm:$0xff]  }
  0x78   :  { %883 = vmatpush1.bf16.msra.mxu0 %v1284_v58  ;;  %v1346_v58 = vld [vmem:[#allocation7 + $0x2b8] ss:$12 sps:$4 sm:$0xff]  }
  0x79   :  { %884 = vmatprep.subr.bf16.mxu0 %v1286_v59  ;;  %v1351_v59 = vld [vmem:[#allocation7 + $0x2d4] ss:$12 sps:$4 sm:$0xff]  }
  0x7c   :  { %885 = vmatpush1.bf16.msra.mxu0 %v1289_v61  ;;  %v1354_v61 = vld [vmem:[#allocation7 + $0x2ec] ss:$12 sps:$4 sm:$0xff]  }
  0x7d   :  { %895 = vmatprep.subr.bf16.mxu0 %v1293_v63 }
 0x115   :  { %v141_v1 = vpop.f32.mrb[0].mxu1 }
 0x116   :  { %v189_v2 = vmax.f32 %v141_v1, 0.0  ;;  %v143_v3 = vpop.f32.mrb[1].mxu1 }
 0x117   :  { %v190_v4 = vmax.f32 %v143_v3, 0.0  ;;  %v145_v5 = vpop.f32.mrb[2].mxu1 }
 0x118   :  { %v146_v6 = vpop.f32.mrb[3].mxu1  ;;  %v193_v10 = vpack.c.bf16 %v189_v2, %v189_v2 }
 0x119   :  { %v194_v7 = vpack.c.bf16 %v190_v4, %v190_v4  ;;  %v327_v4 = vlaneseq }
 0x11b   :  { %886 = vmatprep.mubr.bf16.mxu0 %v194_v7  ;;  %968 = vmatprep.mubr.bf16.mxu1 %v194_v7  ;;  %v328_v5 = vshrl.u32 %v327_v4, 7  ;;  %v325_v7 = vld [vmem:[%s1522_s3] sm:$0x7] }
 0x11c   :  { %887 = vmatmul.mubr.bf16.vlgmr.msra.gmra.mrb[0].mxu0 %v193_v10  ;;  %969 = vmatmul.mubr.bf16.vlgmr.msra.gmra.mrb[8].mxu1 %v193_v10 }
 0x11d   :  { %896 = vmatpush1.bf16.msra.mxu0 %v1291_v8  ;;  %1185 = vmatpush3.bf16.msra.mxu1 %v1295_v9  ;;  %v182_v15 = vpop.f32.mrb[4].mxu1  ;;  %v337_v6 = vsub.s32 2, %v328_v5 }
 0x11e   :  { %897 = vmatprep.subr.bf16.mxu0 %v1298_v11  ;;  %1186 = vmatprep.subr.bf16.mxu1 %v1299_v12  ;;  %v184_v18 = vpop.f32.mrb[5].mxu1  ;;  %v191_v43 = vmax.f32 %v182_v15, 0.0 }
 0x11f   :  { %v192_v19 = vmax.f32 %v184_v18, 0.0  ;;  %v186_v20 = vpop.f32.mrb[6].mxu1  ;;  %v338_v8 = vrot.slane %v325_v7, %v337_v6 }
 0x120   :  { %v187_v21 = vpop.f32.mrb[7].mxu1  ;;  %v195_v47 = vpack.c.bf16 %v191_v43, %v191_v43 }
 0x121   :  { %898 = vmatpush1.bf16.msra.mxu0 %v1296_v13  ;;  %1187 = vmatpush3.bf16.msra.mxu1 %v1300_v14  ;;  %v196_v24 = vpack.c.bf16 %v192_v19, %v192_v19  ;;  %v1019_v21 = vld [vmem:[%s1523_s4] sm:$0x7] }
 0x122   :  { %899 = vmatprep.subr.bf16.mxu0 %v1303_v16  ;;  %1188 = vmatprep.subr.bf16.mxu1 %v1304_v17  ;;  %v329_v16 = vsub.s32 0, %v328_v5  ;;  %v333_v17 = vsub.s32 1, %v328_v5 }
 0x123   :  { %1008 = vmatprep.mubr.bf16.mxu1 %v196_v24  ;;  %927 = vmatprep.mubr.bf16.mxu0 %v196_v24 }
 0x124   :  { %v330_v18 = vrot.slane %v325_v7, %v329_v16  ;;  %v334_v19 = vrot.slane %v325_v7, %v333_v17 }
 0x125   :  { %900 = vmatpush1.bf16.msra.mxu0 %v1301_v22  ;;  %1189 = vmatpush3.bf16.msra.mxu1 %v1305_v23  ;;  %v1024_v23 = vrot.slane %v1019_v21, %v329_v16 }
 0x126   :  { %901 = vmatprep.subr.bf16.mxu0 %v1308_v25  ;;  %1190 = vmatprep.subr.bf16.mxu1 %v1309_v26  ;;  %v1028_v26 = vrot.slane %v1019_v21, %v333_v17 }
 0x129   :  { %902 = vmatpush1.bf16.msra.mxu0 %v1306_v27  ;;  %1191 = vmatpush3.bf16.msra.mxu1 %v1310_v28 }
 0x12a   :  { %903 = vmatprep.subr.bf16.mxu0 %v1313_v29  ;;  %1192 = vmatprep.subr.bf16.mxu1 %v1314_v30 }
 0x12d   :  { %904 = vmatpush1.bf16.msra.mxu0 %v1311_v31  ;;  %1193 = vmatpush3.bf16.msra.mxu1 %v1315_v32  ;;  %v1032_v32 = vrot.slane %v1019_v21, %v337_v6 }
 0x12e   :  { %905 = vmatprep.subr.bf16.mxu0 %v1318_v33  ;;  %1194 = vmatprep.subr.bf16.mxu1 %v1319_v34 }
 0x131   :  { %906 = vmatpush1.bf16.msra.mxu0 %v1316_v35  ;;  %1195 = vmatpush3.bf16.msra.mxu1 %v1320_v36 }
 0x132   :  { %907 = vmatprep.subr.bf16.mxu0 %v1323_v37  ;;  %1196 = vmatprep.subr.bf16.mxu1 %v1324_v38  ;;  %v1161_v38 = vld [vmem:[#allocation2] ss:$0 sm:$0xff] }
 0x135   :  { %908 = vmatpush1.bf16.msra.mxu0 %v1321_v39  ;;  %1197 = vmatpush3.bf16.msra.mxu1 %v1325_v40 }
 0x136   :  { %909 = vmatprep.subr.bf16.mxu0 %v1328_v41  ;;  %1198 = vmatprep.subr.bf16.mxu1 %v1329_v42 }
 0x139   :  { %910 = vmatpush1.bf16.msra.mxu0 %v1326_v44  ;;  %1199 = vmatpush3.bf16.msra.mxu1 %v1330_v45 }
 0x13a   :  { %911 = vmatprep.subr.bf16.mxu0 %v1333_v46 }
 0x13c   :  { %1009 = vmatmul.mubr.bf16.vlgmr.msra.gmra.mrb[12].mxu1 %v195_v47 }
 0x13d   :  { %912 = vmatpush1.bf16.msra.mxu0 %v1331_v48 }
 0x13e   :  { %913 = vmatprep.subr.bf16.mxu0 %v1336_v49 }
 0x141   :  { %914 = vmatpush1.bf16.msra.mxu0 %v1334_v50 }
 0x142   :  { %915 = vmatprep.subr.bf16.mxu0 %v1339_v51 }
 0x145   :  { %916 = vmatpush1.bf16.msra.mxu0 %v1337_v52 }
 0x146   :  { %917 = vmatprep.subr.bf16.mxu0 %v1342_v53 }
 0x149   :  { %918 = vmatpush1.bf16.msra.mxu0 %v1340_v54 }
 0x14a   :  { %919 = vmatprep.subr.bf16.mxu0 %v1345_v55 }
 0x14d   :  { %920 = vmatpush1.bf16.msra.mxu0 %v1343_v56 }
 0x14e   :  { %921 = vmatprep.subr.bf16.mxu0 %v1348_v57 }
 0x151   :  { %922 = vmatpush1.bf16.msra.mxu0 %v1346_v58 }
 0x152   :  { %923 = vmatprep.subr.bf16.mxu0 %v1351_v59 }
 0x155   :  { %924 = vmatpush1.bf16.msra.mxu0 %v1349_v60 }
 0x156   :  { %925 = vmatprep.subr.bf16.mxu0 %v1354_v61 }
 0x159   :  { %926 = vmatpush1.bf16.msra.mxu0 %v1352_v62 }
 0x15c   :  { %928 = vmatmul.mubr.bf16.vlgmr.msra.gmra.mrb[0].mxu0 %v195_v47 }
 0x1ef   :  { %v1178_v63 = vpop.f32.mrb[8].mxu1 }
 0x1f0   :  { %v1179_v0 = vpop.f32.mrb[9].mxu1 }
 0x1f1   :  { %v1180_v1 = vadd.f32 %v1179_v0, %v1178_v63  ;;  %v1181_v2 = vpop.f32.mrb[10].mxu1 }
 0x1f2   :  { %v1182_v3 = vpop.f32.mrb[11].mxu1 }
 0x1f3   :  { %v971_v11 = vadd.f32 %v1180_v1, %v338_v8 }
 0x20f   :  { %v1200_v9 = vpop.f32.mrb[12].mxu1 }
 0x210   :  { %v1201_v10 = vpop.f32.mrb[13].mxu1 }
 0x211   :  { %v1202_v12 = vadd.f32 %v1201_v10, %v1200_v9  ;;  %v1203_v13 = vpop.f32.mrb[14].mxu1 }
 0x212   :  { %v1204_v14 = vpop.f32.mrb[15].mxu1 }
 0x213   :  { %v1011_v15 = vadd.f32 %v1202_v12, %v971_v11 }
 0x215   :  { %v1018_v30 = vmax.f32 %v1011_v15, 0.0 }
 0x217   :  { %v1038_v35 = vmul.f32 %v1032_v32, %v1018_v30 }
 0x22f   :  { %v929_v20 = vpop.f32.mrb[0].mxu0 }
 0x230   :  { %v1206_v22 = vadd.f32 %v929_v20, %v330_v18  ;;  %v931_v24 = vpop.f32.mrb[1].mxu0 }
 0x231   :  { %v1207_v25 = vadd.f32 %v931_v24, %v334_v19  ;;  %v933_v27 = vpop.f32.mrb[2].mxu0 }
 0x232   :  { %v1016_v28 = vmax.f32 %v1206_v22, 0.0  ;;  %v934_v29 = vpop.f32.mrb[3].mxu0 }
 0x233   :  { %v1017_v31 = vmax.f32 %v1207_v25, 0.0 }
 0x234   :  { %v1036_v33 = vmul.f32 %v1024_v23, %v1016_v28 }
 0x235   :  { %v1037_v34 = vmul.f32 %v1028_v26, %v1017_v31 }
 0x237   :  { %v1039_v36 = vadd.f32 %v1037_v34, %v1036_v33 }
 0x239   :  { %v1040_v37 = vadd.f32 %v1039_v36, %v1038_v35 }
 0x23b   :  { %1041 = vadd.xlane.f32.xlu0 %v1040_v37 }
 0x2c8   :  { %v1042_v39 = vpop.xlane.xlu0 %1041 }
 0x2c9   :  { %v1050_v40 = vadd.f32 %v1161_v38, %v1042_v39 }
 0x2cb   :  { %1052 = vst.msk [vmem:[%s1525_s6] sm:$0xff] %vm1051_vm3, %v1050_v40 }
 0x2cc   :  { %1057 = vsyncpa [#allocation4], 1 }
 0x2cd   :  { %1058 = vsyncpa [#allocation6], 1 }

</bundles_post_ra>
